<compile_context>
chip_gen: v6e
topology: v6e:2x2x1
jax: 0.10.0
libtpu: 0.0.40
codegen_flags: <defaults>
</compile_context>

<pallas_src>
import functools
import math

import jax
import jax.numpy as jnp
from jax.experimental import pallas as pl
from jax.experimental.pallas import tpu as pltpu

_MIB = 1024 * 1024


def _layer_scale_kernel(x_ref, gamma_ref, o_ref):
    # x_ref: (block_rows, block_dim); gamma_ref: (1, block_dim); o_ref like x.
    # Multiply in the promoted dtype (matches torch's `x * gamma`), then cast
    # to the requested output dtype (no-op for the default promoted output).
    o_ref[...] = (x_ref[...] * gamma_ref[...]).astype(o_ref.dtype)


def _tpu_info():
    try:
        return pltpu.get_tpu_info()
    except Exception:
        return None


def _vmem_capacity_bytes(info) -> int:
    """Physical VMEM per TensorCore; conservative default if query fails."""
    default = 64 * _MIB  # v7x per-TC size; safe lower bound everywhere
    if info is not None:
        for attr in ("vmem_capacity_bytes", "vmem_bytes", "vmem_size_bytes"):
            val = getattr(info, attr, None)
            if isinstance(val, int) and val > 0:
                return val
    return default


def _num_tensorcores(info, vmem_cap: int) -> int:
    """TensorCores per chip (for dimension_semantics='parallel' sharding)."""
    if info is not None:
        for attr in ("num_tensorcores", "tensorcore_count", "num_cores", "core_count"):
            val = getattr(info, attr, None)
            if isinstance(val, int) and 0 < val <= 8:
                return val
    # Heuristic: 64 MiB/TC parts (v7x) are the 2-TC-per-chip generation;
    # 128 MiB parts (v5e/v6e) are single-TC.
    return 2 if vmem_cap <= 64 * _MIB else 1


def _round_down(value: int, multiple: int) -> int:
    return (value // multiple) * multiple


def _choose_tiles(rows, dim, in_item, out_item, sublane, block_rows_override):
    """Pick (block_rows, block_dim) from the double-buffered VMEM budget."""
    info = _tpu_info()
    cap = _vmem_capacity_bytes(info)
    num_tc = _num_tensorcores(info, cap)

    # Pipelined footprint ~= 2 * block_rows * block_dim * (in_item + out_item)
    # (double-buffered input + output tiles). Keep ~16 MiB of headroom for
    # Mosaic scratch / semaphores / gamma; on 128 MiB parts keep 25% free.
    budget = min(cap - 16 * _MIB, int(cap * 0.75))
    budget = max(budget, 8 * _MIB)
    bytes_per_row = 2 * dim * (in_item + out_item)
    budget_rows = max(budget // bytes_per_row, 1)

    if block_rows_override is not None:
        block_rows = min(block_rows_override, rows)
        if block_rows < rows:
            # Tile-shape legality: multiple of the sublane packing (8/16/32)
            # unless it spans the full rows extent.
            block_rows = max(_round_down(block_rows, sublane), sublane)
        return block_rows, dim

    if budget_rows < 8 * sublane and dim > 128 and dim % 128 == 0:
        # dim is extremely wide: tile dim too so both tile dims stay large.
        block_rows = min(rows, 8 * sublane)
        if block_rows < rows:
            block_rows = max(_round_down(block_rows, sublane), sublane)
        block_dim = budget // (2 * block_rows * (in_item + out_item))
        block_dim = max(_round_down(block_dim, 128), 128)
        block_dim = min(block_dim, dim)
        return block_rows, block_dim

    block_rows = min(rows, budget_rows)

    # For large transfers keep at least num_tc * 3 grid steps so the row axis
    # can shard across the TensorCores of a v7x chip and each core still has
    # prefetch(i+1)/compute(i)/writeback(i-1) overlap. Gated on transfer size:
    # forcing extra ~0.35 us steps on a tensor that already fits in a tile or
    # two only adds per-step overhead on single-TC chips with no DMA to hide.
    min_steps = num_tc * 3
    total_bytes = rows * dim * (in_item + out_item)
    if total_bytes >= min_steps * 4 * _MIB and rows >= min_steps * sublane:
        per_step_cap = max(_round_down(-(-rows // min_steps), sublane), sublane)
        block_rows = min(block_rows, per_step_cap)

    if block_rows < rows:
        block_rows = max(_round_down(block_rows, sublane), sublane)
    return block_rows, dim


def _layer_scale_2d(x2, gamma_row, out_dtype, block_rows_override):
    """One pallas_call over a 2-D (rows, d) view with gamma_row of shape (1, d)."""
    rows, d = x2.shape
    in_item = jnp.dtype(x2.dtype).itemsize
    out_item = jnp.dtype(out_dtype).itemsize
    gamma_item = jnp.dtype(gamma_row.dtype).itemsize
    # Sublane packing: 8 rows/vreg for 32-bit, 16 for bf16, 32 for int8.
    sublane = max(8, 32 // min(in_item, out_item))

    block_rows, block_dim = _choose_tiles(
        rows, d, in_item, out_item, sublane, block_rows_override)

    # Explicit scoped-VMEM limit: double-buffered in+out tiles + gamma + slack.
    cap = _vmem_capacity_bytes(_tpu_info())
    tile_bytes = block_rows * block_dim * (in_item + out_item)
    vmem_limit = 2 * tile_bytes + 2 * block_dim * gamma_item + (2 << 20)
    vmem_limit = int(min(max(vmem_limit, 16 * _MIB), cap))

    cost = pl.CostEstimate(
        flops=rows * d,
        transcendentals=0,
        bytes_accessed=rows * d * (in_item + out_item) + d * gamma_item,
    )

    if block_dim == d:
        # Common case: whole feature dim fits in one block -> collapse to a
        # 1-D grid. gamma is DMA'd once and stays VMEM-resident; no per-step
        # scalar index work for a degenerate j axis.
        grid = (pl.cdiv(rows, block_rows),)
        in_specs = [
            pl.BlockSpec((block_rows, d), lambda i: (i, 0)),
            pl.BlockSpec((1, d), lambda i: (0, 0)),
        ]
        out_spec = pl.BlockSpec((block_rows, d), lambda i: (i, 0))
        dims = ("parallel",)
    else:
        grid = (pl.cdiv(rows, block_rows), pl.cdiv(d, block_dim))
        in_specs = [
            pl.BlockSpec((block_rows, block_dim), lambda i, j: (i, j)),
            pl.BlockSpec((1, block_dim), lambda i, j: (0, j)),
        ]
        out_spec = pl.BlockSpec((block_rows, block_dim), lambda i, j: (i, j))
        dims = ("parallel", "parallel")

    return pl.pallas_call(
        _layer_scale_kernel,
        out_shape=jax.ShapeDtypeStruct((rows, d), out_dtype),
        grid_spec=pl.GridSpec(grid=grid, in_specs=in_specs, out_specs=out_spec),
        compiler_params=pltpu.CompilerParams(
            dimension_semantics=dims,
            vmem_limit_bytes=vmem_limit,
        ),
        cost_estimate=cost,
    )(x2, gamma_row)


@functools.partial(jax.jit, static_argnames=("out_dtype", "block_rows"))
def layer_scale(x, gamma, *, out_dtype=None, block_rows=None):
    """Computes x * gamma with gamma (dim,) broadcast over leading axes.

    out_dtype: optional output-dtype override. Default follows PyTorch-style
      promotion (result_type(x, gamma)). Passing x.dtype for bf16 activations
      with f32 gamma writes bf16 instead of f32 and cuts HBM write traffic in
      half; the multiply itself still happens in the promoted dtype.
    """
    orig_shape = x.shape
    dim = orig_shape[-1]
    assert gamma.shape == (dim,), f"gamma shape {gamma.shape} != ({dim},)"

    if out_dtype is None:
        out_dtype = jnp.result_type(x.dtype, gamma.dtype)
    out_dtype = jnp.dtype(out_dtype)

    if x.size == 0:
        # Empty input: avoid a zero-sized grid at trace time.
        return jnp.zeros(orig_shape, out_dtype)

    x2 = x.reshape(-1, dim)
    rows = x2.shape[0]
    gamma2 = gamma
    d = dim

    # Lane-dense folding: if dim is not a multiple of 128, fold k consecutive
    # rows into the lane axis so the output last dim is a multiple of 128
    # (avoids masked vst.msk partial stores). Broadcast semantics are
    # preserved by tiling gamma k times; the reshape is a free bitcast
    # (row-major contiguous).
    if dim % 128 != 0:
        k = 128 // math.gcd(dim, 128)
        if k > 1 and rows % k == 0:
            rows //= k
            d = dim * k
            x2 = x2.reshape(rows, d)
            gamma2 = jnp.tile(gamma2, k)
        # TODO(synk): when rows % k != 0 we fall back to a lane-sparse layout
        # (masked partial stores on a sub-128 last dim). Splitting into a
        # folded bulk + remainder call, or padding rows, both cost an extra
        # full HBM copy in XLA, so the fallback is kept; for awkward shapes
        # fuse this multiply into the producer/consumer epilogue instead.

    gamma2 = gamma2.reshape(1, d)
    out = _layer_scale_2d(x2, gamma2, out_dtype, block_rows)
    return out.reshape(orig_shape)


class LayerScaleJAX:
    """JAX/Pallas equivalent of the PyTorch LayerScale module."""

    def __init__(self, dim: int, init_scale: float = 1e-05, dtype=jnp.float32):
        if init_scale is None:
            self.gamma = None
        else:
            # Deterministic init: torch.full((dim,), init_scale)
            self.gamma = jnp.full((dim,), init_scale, dtype=dtype)

    def __call__(self, x, out_dtype=None):
        if self.gamma is None:
            return x
        return layer_scale(x, self.gamma, out_dtype=out_dtype)


if __name__ == "__main__":
    key = jax.random.PRNGKey(0)
    k1, k2, k3, k4 = jax.random.split(key, 4)

    # Small shape consistent with the module: (batch, seq, dim).
    batch, seq, dim = 2, 8, 32
    x = jax.random.normal(k1, (batch, seq, dim), dtype=jnp.float32)

    module = LayerScaleJAX(dim=dim, init_scale=1e-05)
    out = jax.block_until_ready(module(x))
    ref = x * module.gamma
    assert out.shape == x.shape
    assert out.dtype == ref.dtype
    assert jnp.array_equal(out, ref)

    # Lane-multiple dim path (no row->lane folding), 1-D grid collapse.
    dim2 = 256
    xb = jax.random.normal(k2, (4, 16, dim2), dtype=jnp.float32)
    gb = jnp.full((dim2,), 1e-05, dtype=jnp.float32)
    outb = jax.block_until_ready(layer_scale(xb, gb))
    assert jnp.array_equal(outb, xb * gb)

    # Mixed dtype: bf16 activations * f32 gamma promotes to f32 (PyTorch-like).
    xc = jax.random.normal(k3, (batch, seq, dim), dtype=jnp.bfloat16)
    outc = jax.block_until_ready(layer_scale(xc, module.gamma))
    refc = xc.astype(jnp.float32) * module.gamma
    assert outc.dtype == jnp.float32
    assert jnp.allclose(outc, refc)

    # Opt-in bf16 output on mixed precision (halves HBM write traffic).
    outd = jax.block_until_ready(layer_scale(xc, module.gamma, out_dtype=jnp.bfloat16))
    refd = (xc.astype(jnp.float32) * module.gamma).astype(jnp.bfloat16)
    assert outd.dtype == jnp.bfloat16
    assert jnp.allclose(outd.astype(jnp.float32), refd.astype(jnp.float32),
                        rtol=1e-2, atol=1e-2)

    # Ragged dim with rows not divisible by the fold factor -> fallback path.
    dim3 = 100
    xe = jax.random.normal(k4, (3, 5, dim3), dtype=jnp.float32)
    ge = jnp.full((dim3,), 1e-05, dtype=jnp.float32)
    oute = jax.block_until_ready(layer_scale(xe, ge))
    assert jnp.array_equal(oute, xe * ge)

    # init_scale=None is identity (no kernel needed).
    ident = LayerScaleJAX(dim=dim, init_scale=None)
    out_id = jax.block_until_ready(ident(x))
    assert jnp.array_equal(out_id, x)

    print("KERNEL_OK")
</pallas_src>

<mosaic_0001>
module attributes {stable_mosaic.version = 11 : i64} {
  func.func @_layer_scale_kernel(%arg0: i32, %arg1: memref<4x128xf32, #tpu.memory_space<vmem>>, %arg2: memref<1x128xf32, #tpu.memory_space<vmem>>, %arg3: memref<4x128xf32, #tpu.memory_space<vmem>>) attributes {dimension_semantics = [#tpu.dimension_semantics<parallel>], iteration_bounds = array<i64: 1>, scalar_prefetch = 0 : i64, scratch_operands = 0 : i64, tpu.core_type = #tpu.core_type<tc>, window_params = [{transform_indices = @transform_0, window_bounds = array<i64: 4, 128>}, {pipeline_mode = #tpu.pipeline_mode<synchronous>, transform_indices = @transform_1, window_bounds = array<i64: 1, 128>}, {transform_indices = @transform_2, window_bounds = array<i64: 4, 128>}]} {
    %c0 = arith.constant 0 : index
    %c0_0 = arith.constant 0 : index
    %0 = vector.load %arg1[%c0, %c0_0] : memref<4x128xf32, #tpu.memory_space<vmem>>, vector<4x128xf32>
    %c0_1 = arith.constant 0 : index
    %c0_2 = arith.constant 0 : index
    %1 = vector.load %arg2[%c0_1, %c0_2] : memref<1x128xf32, #tpu.memory_space<vmem>>, vector<1x128xf32>
    %2 = vector.broadcast %1 : vector<1x128xf32> to vector<4x128xf32>
    %3 = arith.mulf %0, %2 : vector<4x128xf32>
    %c0_3 = arith.constant 0 : index
    %c0_4 = arith.constant 0 : index
    %4 = vector.load %arg3[%c0_3, %c0_4] : memref<4x128xf32, #tpu.memory_space<vmem>>, vector<4x128xf32>
    tpu.vector_store %arg3[%c0_3, %c0_4], %3 {strides = array<i32>} : memref<4x128xf32, #tpu.memory_space<vmem>>, vector<4x128xf32>,
    return
  }
  func.func @transform_0(%arg0: i32) -> (i32, i32) {
    %c0_i32 = arith.constant 0 : i32
    %c0_i32_0 = arith.constant 0 : i32
    return %arg0, %c0_i32 : i32, i32
  }
  func.func @transform_1(%arg0: i32) -> (i32, i32) {
    %c0_i32 = arith.constant 0 : i32
    %c0_i32_0 = arith.constant 0 : i32
    %c0_i32_1 = arith.constant 0 : i32
    return %c0_i32, %c0_i32_0 : i32, i32
  }
  func.func @transform_2(%arg0: i32) -> (i32, i32) {
    %c0_i32 = arith.constant 0 : i32
    %c0_i32_0 = arith.constant 0 : i32
    return %arg0, %c0_i32 : i32, i32
  }
}

</mosaic_0001>

<bundles_post_ra>
// kernel: tile.9
= control target key start
LH: loop header
LB: loop body
LE: loop exit
PB: predicated region body
PF: predicated region fallthrough
CT: control target
= control target key end

     0   :  { %vm8_vm0 = vcmask 261120   ;;  %s40_s8 = smov 32   ;;  %s41_s9 = smov 64   ;;  %vm14_vm1 = vcmask 1048320   ;;  %vm20_vm2 = vcmask 785920   ;;  %vm26_vm3 = vcmask 523520   ;;  %s58_s0 = inlined_call_operand.vmem [shape: f32[4,32], index: 0, kind: input, shape index: {}]   ;;  %s59_s1 = inlined_call_operand.vmem [shape: f32[1,128], index: 1, kind: output, shape index: {}]  }
   0x1   :  { %v5_v0 = vld [vmem:[%s58_s0] sm:$0xf]  ;;  %s39_s0 = smov 96  }
   0x2   :  { %6 = vst [vmem:[#allocation1] sm:$0xf] %v5_v0 }
   0x9   :  { %v11_v1 = vld [vmem:[#allocation1 + $0x3] sm:$0x1]   ;;  %v23_v2 = vld [vmem:[#allocation1 + $0x1] sm:$0x1]   ;;  %v7_v3 = vld [vmem:[#allocation1] sm:$0x1]  }
   0xa   :  { %12 = vrot.lane.b32.xlu0 %v11_v1, %s39_s0  ;;  %24 = vrot.lane.b32.xlu1 %v23_v2, %s40_s8  ;;  %v17_v4 = vld [vmem:[#allocation1 + $0x2] sm:$0x1]   ;;  %9 = vst.msk [vmem:[#allocation0] sm:$0x1] %vm8_vm0, %v7_v3  }
   0xe   :  { %18 = vrot.lane.b32.xlu0 %v17_v4, %s41_s9 }
  0x7c   :  { %v13_v5 = vpop.permute.xlu0 %12   ;;  %v25_v6 = vpop.permute.xlu1 %24  }
  0x7d   :  { %15 = vst.msk [vmem:[#allocation0] sm:$0x1] %vm14_vm1, %v13_v5  }
  0x80   :  { %v19_v7 = vpop.permute.xlu0 %18  }
  0x81   :  { %21 = vst.msk [vmem:[#allocation0] sm:$0x1] %vm20_vm2, %v19_v7  }
  0x82   :  { %27 = vst.msk [vmem:[#allocation0] sm:$0x1] %vm26_vm3, %v25_v6  }
  0x89   :  { %v32_v8 = vld [vmem:[#allocation0] sm:$0x1] }
  0x8a   :  { %35 = vst [vmem:[%s59_s1] sm:$0x1] %v32_v8 }

// kernel: tile.8
= control target key start
LH: loop header
LB: loop body
LE: loop exit
PB: predicated region body
PF: predicated region fallthrough
CT: control target
= control target key end

     0   :  { %s22_s0 = inlined_call_operand.vmem [shape: f32[32], index: 0, kind: input, shape index: {}]   ;;  %s23_s1 = inlined_call_operand.vmem [shape: f32[4,32], index: 1, kind: output, shape index: {}]  }
   0x1   :  { %v4_v0 = vld [vmem:[%s22_s0] ss:$0 sm:$0xff] }
   0x2   :  { %5 = vst [vmem:[%s23_s1] sm:$0xf] %v4_v0 }

// kernel: layer_scale.1
= control target key start
LH: loop header
LB: loop body
LE: loop exit
PB: predicated region body
PF: predicated region fallthrough
CT: control target
= control target key end

     0   :  { %s50_s0 = inlined_call_operand.vmem [shape: f32[4,128], index: 0, kind: input, shape index: {}]   ;;  %s51_s1 = inlined_call_operand.vmem [shape: f32[1,128], index: 1, kind: input, shape index: {}]   ;;  %s52_s2 = inlined_call_operand.vmem [shape: f32[4,128], index: 2, kind: output, shape index: {}]  }
   0x1   :  { %v11_v0 = vld [vmem:[%s50_s0] sm:$0xf] }
   0x2   :  { %v25_v1 = vld [vmem:[%s51_s1] ss:$0 sm:$0xff] }
   0x3   :  { %v19_v2 = vmul.f32 %v25_v1, %v11_v0 }
   0x5   :  { %20 = vst [vmem:[%s52_s2] sm:$0xf] %v19_v2 }

</bundles_post_ra>
